<compile_context>
chip_gen: v5e
topology: v5e:2x2
jax: 0.10.0
libtpu: 0.0.40
codegen_flags: <defaults>
</compile_context>

<pallas_src>
import jax
import jax.numpy as jnp
from jax.experimental import pallas as pl
from jax.experimental.pallas import tpu as pltpu


def _sum_hardsigmoid_kernel(x_ref, o_ref):
    # x_ref: (16, 128) f32 in VMEM — exactly two full (8 sublane x 128 lane) vregs.
    # o_ref: (1, 1)   f32 in SMEM — scalar result (no padded VMEM tile / masked store).
    rows = x_ref.shape[0]
    half = rows // 2
    # One VPU vadd collapses the two vregs into a single vreg (static slices = free views)...
    a = x_ref[0:half, :] + x_ref[half:rows, :]
    # ...then a single sublane+lane XLU reduce to a scalar (keep off the MXU on purpose).
    s = jnp.sum(a)
    # hardsigmoid on the scalar: clamp(s + 3, 0, 6) / 6  (divide for parity with reference).
    v = jnp.minimum(jnp.maximum(s + 3.0, 0.0), 6.0) / 6.0
    o_ref[0, 0] = v


def model_forward(x2: jax.Array) -> jax.Array:
    n, f = x2.shape
    # Module spec fixes the input to (1, 2048); the all-ones (1, 2048) weight is a
    # compile-time constant, so linear(x, ones) == sum(x, -1): no weight DMA, no matmul.
    assert n == 1 and f % 256 == 0, (n, f)
    # Pack the single 2048-wide row into full (sublane, lane) vregs: (1, 2048) -> (16, 128).
    # x2 is row-major contiguous, so this reshape lowers to a bitcast (no HBM copy).
    xr = x2.reshape(n * f // 128, 128)
    return pl.pallas_call(
        _sum_hardsigmoid_kernel,
        out_shape=jax.ShapeDtypeStruct((n, 1), jnp.float32),
        in_specs=[pl.BlockSpec(memory_space=pltpu.MemorySpace.VMEM)],
        out_specs=pl.BlockSpec(memory_space=pltpu.MemorySpace.SMEM),
    )(xr)


if __name__ == "__main__":
    key = jax.random.PRNGKey(0)
    x2 = jax.random.normal(key, (1, 2048), dtype=jnp.float32)

    out = model_forward(x2)
    out = jax.block_until_ready(out)

    # Pure-JAX reference: linear with all-ones (1, 2048) weight + hardsigmoid.
    ref = jnp.clip(jnp.sum(x2, axis=-1, keepdims=True) + 3.0, 0.0, 6.0) / 6.0
    assert out.shape == (1, 1), out.shape
    assert jnp.allclose(out, ref, atol=1e-5, rtol=1e-5), (out, ref)

    print("KERNEL_OK")
</pallas_src>

<mosaic_0001>
module attributes {stable_mosaic.version = 11 : i64} {
  func.func @_sum_hardsigmoid_kernel(%arg0: memref<16x128xf32, #tpu.memory_space<vmem>>, %arg1: memref<1x1xf32, #tpu.memory_space<smem>>) attributes {dimension_semantics = [], scalar_prefetch = 0 : i64, scratch_operands = 0 : i64, tpu.core_type = #tpu.core_type<tc>} {
    %c0 = arith.constant 0 : index
    %c0_0 = arith.constant 0 : index
    %0 = vector.load %arg0[%c0, %c0_0] : memref<16x128xf32, #tpu.memory_space<vmem>>, vector<8x128xf32>
    %c8 = arith.constant 8 : index
    %c0_1 = arith.constant 0 : index
    %1 = vector.load %arg0[%c8, %c0_1] : memref<16x128xf32, #tpu.memory_space<vmem>>, vector<8x128xf32>
    %2 = arith.addf %0, %1 : vector<8x128xf32>
    %3 = vector.shape_cast %2 : vector<8x128xf32> to vector<1x8x128xf32>
    %cst = arith.constant dense<0.000000e+00> : vector<1xf32>
    %4 = vector.multi_reduction <add>, %3, %cst [1, 2] : vector<1x8x128xf32> to vector<1xf32>
    %5 = vector.shape_cast %4 : vector<1xf32> to vector<1x1x1xf32>
    %6 = vector.extract %5[0, 0, 0] : f32 from vector<1x1x1xf32>
    %cst_2 = arith.constant 3.000000e+00 : f32
    %7 = arith.addf %6, %cst_2 : f32
    %cst_3 = arith.constant 0.000000e+00 : f32
    %8 = arith.maximumf %7, %cst_3 : f32
    %cst_4 = arith.constant 6.000000e+00 : f32
    %9 = arith.minimumf %8, %cst_4 : f32
    %cst_5 = arith.constant 6.000000e+00 : f32
    %10 = arith.divf %9, %cst_5 : f32
    %c0_6 = arith.constant 0 : index
    %c0_7 = arith.constant 0 : index
    %11 = memref.load %arg1[%c0_6, %c0_7] : memref<1x1xf32, #tpu.memory_space<smem>>
    memref.store %10, %arg1[%c0_6, %c0_7] : memref<1x1xf32, #tpu.memory_space<smem>>
    return
  }
}

</mosaic_0001>

<bundles_post_ra>
// kernel: tpu_custom_call.1
= control target key start
LH: loop header
LB: loop body
LE: loop exit
PB: predicated region body
PF: predicated region fallthrough
CT: control target
= control target key end

     0   :  { %6 = vsyncpa [#allocation3], 0  ;;  %s143_s0 = inlined_call_operand.hbm [shape: f32[16,128], index: 0, kind: input, shape index: {}]   ;;  %s144_s1 = inlined_call_operand.hbm [shape: f32[1,1], index: 1, kind: output, shape index: {}]  }
   0x1   :  { %7 = vsyncpa [#allocation4], 0  ;;  %s12_s8 = sshll.u32 %s143_s0, 4  ;;  %s120_s9 = smov [#allocation2]   ;;  %s13_s8 = int_to_ptr.hbm [resolvable:$true] %s12_s8 }
   0x2   :  { %s14_s10 = sshll.u32 %s120_s9, 4  ;;  %s121_s11 = smov 128   ;;  %s15_s10 = int_to_ptr.vmem [resolvable:$true] %s14_s10 }
   0x3   :  { %s122_s12 = smov 8  }
   0x4   :  { %20 = dma.hbm_to_vmem [thread:$0]  %s13_s8, 256, %s15_s10, [#allocation3], %s121_s11, %s121_s11, %s122_s12  }
   0x5   :  { %116 = dma.done.wait [#allocation3], 256  }
   0x6   :  { %117 = vsyncadd [#allocation3], 4294967040  ;;  %v25_v0 = vld [vmem:[#allocation2] sm:$0xff]  ;;  %v26_v1 = vld [vmem:[#allocation2 + $0x8] sm:$0xff]  ;;  %v123_v3 = vmov 6.0   ;;  %s56_s16 = sshll.u32 %s144_s1, 4  ;;  %s57_s16 = int_to_ptr.hbm [resolvable:$true] %s56_s16 }
   0x7   :  { %v27_v2 = vadd.f32 %v26_v1, %v25_v0  ;;  %78 = vrcp.f32 %v123_v3  ;;  %s124_s18 = smov 0.0   ;;  %s125_s20 = smov 6.0  }
   0x8   :  { %s126_s23 = smov [#allocation5]  }
   0x9   :  { %28 = vadd.xlane.f32.xlu0 %v27_v2 }
   0xd   :  { %v79_v4 = vpop.eup %78 }
   0xe   :  { %v41_v5 = vmul.f32 6.0, %v79_v4  ;;  %vm45_vm0 = vweird.f32 %v79_v4 }
  0x10   :  { %v42_v6 = vsub.f32 1.0, %v41_v5 }
  0x12   :  { %v43_v10 = vmul.f32 %v79_v4, %v42_v6 }
  0x14   :  { %v44_v13 = vadd.f32 %v79_v4, %v43_v10 }
  0x16   :  { %v46_v16 = vsel %vm45_vm0, %v79_v4, %v44_v13 }
  0x7c   :  { %v29_v7 = vpop.xlane.xlu0 %28 }
  0x7d   :  { %v30_v8 = vrot.slane %v29_v7, 4 }
  0x7f   :  { %v31_v9 = vadd.f32 %v30_v8, %v29_v7 }
  0x81   :  { %v32_v11 = vrot.slane %v31_v9, 2 }
  0x83   :  { %v33_v12 = vadd.f32 %v32_v11, %v31_v9 }
  0x85   :  { %v34_v14 = vrot.slane %v33_v12, 1 }
  0x87   :  { %v35_v15 = vadd.f32 %v34_v14, %v33_v12 }
  0x89   :  { %67 = vpush %v35_v15 }
  0x8a   :  { %69 = vpush %v46_v16 }
  0xba   :  { %s68_s0 = spop %67 }
  0xbb   :  { %s37_s13 = sadd.f32 3.0, %s68_s0  ;;  %s70_s17 = spop %69 }
  0xbd   :  { %s38_s19 = smax.f32 %s124_s18, %s37_s13 }
  0xbe   :  { %s39_s21 = smin.f32 %s125_s20, %s38_s19 }
  0xbf   :  { %s48_s22 = smul.f32 %s70_s17, %s39_s21 }
  0xc1   :  { %50 = sst [smem:[#allocation5]] %s48_s22 }
  0xc2   :  { %59 = dma.smem_to_hbm %s126_s23, 16, %s57_s16, [#allocation4]  }
  0xc3   :  { %118 = dma.done.wait [#allocation4], 16  }
  0xc4   :  { %119 = vsyncadd [#allocation4], 4294967280 }
  0xc5   :  { %64 = sfence }
  0xc6   :  { %65 = vsyncpa [#allocation3], 1 }
  0xc7   :  { %66 = vsyncpa [#allocation4], 1 }

</bundles_post_ra>
